<compile_context>
chip_gen: v5e
topology: v5e:2x2
jax: 0.10.0
libtpu: 0.0.40
codegen_flags: <defaults>
</compile_context>

<pallas_src>
import jax
import jax.numpy as jnp
from jax.experimental import pallas as pl
from jax.experimental.pallas import tpu as pltpu

N_LEAVES = 5   # h0..h4
N_PARAMS = 4   # [root_k0, root_k1, or0_k, or1_k]  (raw, pre-softplus)
LANES = 128


def composite_set_kernel(consts_ref, w_ref, b_ref, x_ref, out_ref):
    # x_ref   : [D, bs, 128] VMEM  feature-major planes; (sublane, lane) = batch
    # w_ref   : [D, N]       SMEM  leaf weights (OR-child columns pre-scaled)
    # b_ref   : [1, N]       SMEM  leaf biases  (OR-child columns pre-scaled)
    # consts  : [8]          SMEM  hoisted fold constants (see wrapper)
    # out_ref : [bs, 128]    VMEM  lane-dense lower-bound slab
    D = x_ref.shape[0]
    N = w_ref.shape[1]

    # Leaf affine values, d-outer: each x[d] slab is loaded from VMEM once and
    # feeds all N=5 accumulators (40 scalar-broadcast VPU mul/adds; no MXU
    # round-trip for a D=8, N=5 contraction).
    # TODO(synk): on v7x (VALU-bound) this 5x8 matvec could go to the idle MXU,
    # but that needs a layout the MXU can consume without an in-kernel relayout
    # of [D, bs, 128]; the VPU path is kept (roofline-matched on v5e/v6e).
    x0 = x_ref[0].astype(jnp.float32)
    v = [x0 * w_ref[0, j] + b_ref[0, j] for j in range(N)]
    for d in range(1, D):
        xd = x_ref[d].astype(jnp.float32)
        for j in range(N):
            v[j] = v[j] + xd * w_ref[d, j]

    inv_or0, cor_or0 = consts_ref[0], consts_ref[1]
    inv_or1, cor_or1 = consts_ref[2], consts_ref[3]
    k_and0, inv_and0 = consts_ref[4], consts_ref[5]
    k_and1, inv_and1 = consts_ref[6], consts_ref[7]

    # Pairwise smooth fold on already k-scaled inputs:
    #   (1/k) * log(exp(ka) + exp(kb)) - corr
    #     = (max(ka, kb) + log(1 + exp(-|ka - kb|))) * (1/k) - corr
    # (log1p(exp(-d)) would be marginally more accurate; plain log keeps the
    #  known-good Mosaic lowering and the difference is below f32 eps here.)
    def fold(ka, kb, inv_k, corr):
        m = jnp.maximum(ka, kb)
        return (m + jnp.log(1.0 + jnp.exp(-jnp.abs(ka - kb)))) * inv_k - corr

    lb0 = fold(v[0], v[1], inv_or0, cor_or0)                 # OR child 0 (h0,h1)
    lb1 = fold(v[2], v[3], inv_or1, cor_or1)                 # OR child 1 (h2,h3)
    lb = fold(k_and0 * lb0, k_and0 * lb1, inv_and0, 0.0)     # root AND, step 0
    lb = fold(k_and1 * lb, k_and1 * v[4], inv_and1, 0.0)     # root AND, step 1

    out_ref[...] = lb.astype(out_ref.dtype)


def _plan_batch_tiles(R, target_bs, sublane):
    """Pick (bs, grid): bs = sublane rows per grid step, grid = number of steps.

    Pads nothing: the trailing block may be partial (Pallas masks OOB stores).
    Keeps grid >= 2 when R allows it so a v7x megacore can use both TensorCores.
    """
    if R <= sublane:
        return R, 1                                   # single full-extent block
    bs = min(target_bs, R)
    if bs < R:
        bs = max(sublane, (bs // sublane) * sublane)  # (8,128) tiling granularity
    else:
        half = -(-R // 2)
        bs = -(-half // sublane) * sublane
        if bs >= R:
            return R, 1
    return bs, -(-R // bs)


def composite_set_forward_planes(x_planes, w, b, params, *, target_bs=512):
    """Feature-major entry: x_planes is [D, R, 128] or [D, Bp] with Bp % 128 == 0.

    Preferred for repeated CBF evaluation: a producer that persists x in this
    layout avoids the [B, D] -> [D, B] transpose HBM pass (the kernel itself
    only moves ~36 B/row).  Returns lb of shape [R*128, 1]; caller slices to
    the valid batch length.
    """
    if x_planes.ndim == 2:
        D, Bp = x_planes.shape
        if Bp % LANES != 0:
            raise ValueError("feature-major input needs batch % 128 == 0")
        x_planes = x_planes.reshape(D, Bp // LANES, LANES)
    D, R, lanes = x_planes.shape
    assert lanes == LANES
    assert w.shape == (D, N_LEAVES) and b.shape == (1, N_LEAVES)

    x_bytes = jnp.dtype(x_planes.dtype).itemsize
    sublane = 8 * (4 // max(1, x_bytes))              # 8 rows f32, 16 rows bf16
    bs, grid = _plan_batch_tiles(R, target_bs, sublane)

    # --- hoisted scalar constants (softplus / reciprocals / log(2)/k) --------
    sp = jax.nn.softplus(params.astype(jnp.float32))[0]   # [k_and0,k_and1,k_or0,k_or1]
    k_and0, k_and1, k_or0, k_or1 = sp[0], sp[1], sp[2], sp[3]
    log2 = jnp.log(jnp.float32(2.0))
    consts = jnp.stack([
        1.0 / k_or0, log2 / k_or0,       # fold 0 (OR child 0) — inputs pre-scaled
        1.0 / k_or1, log2 / k_or1,       # fold 1 (OR child 1) — inputs pre-scaled
        -k_and0, -1.0 / k_and0,          # fold 2 (root AND step 0)
        -k_and1, -1.0 / k_and1,          # fold 3 (root AND step 1)
    ]).astype(jnp.float32)
    # Pre-scale OR-child leaves by softplus(k_or): folds 0/1 skip k*a, k*b muls.
    leaf_scale = jnp.stack([k_or0, k_or0, k_or1, k_or1, jnp.float32(1.0)])
    w_s = w.astype(jnp.float32) * leaf_scale[None, :]
    b_s = b.astype(jnp.float32) * leaf_scale[None, :]

    # --- VMEM budget / compiler params ---------------------------------------
    tile_bytes = 2 * (D * bs * LANES * x_bytes + bs * LANES * 4)  # double-buffered
    cp_kwargs = dict(dimension_semantics=("parallel",))
    if tile_bytes > (12 << 20):       # would crowd v5e's 16 MiB scoped default
        cp_kwargs["vmem_limit_bytes"] = int(tile_bytes) + (4 << 20)

    out2d = pl.pallas_call(
        composite_set_kernel,
        out_shape=jax.ShapeDtypeStruct((R, LANES), jnp.float32),
        grid_spec=pltpu.PrefetchScalarGridSpec(
            num_scalar_prefetch=0,
            grid=(grid,),
            in_specs=[
                pl.BlockSpec(memory_space=pltpu.MemorySpace.SMEM),   # consts
                pl.BlockSpec(memory_space=pltpu.MemorySpace.SMEM),   # w  (D,N)
                pl.BlockSpec(memory_space=pltpu.MemorySpace.SMEM),   # b  (1,N)
                pl.BlockSpec((D, bs, LANES), lambda i: (0, i, 0)),   # x tile
            ],
            out_specs=pl.BlockSpec((bs, LANES), lambda i: (i, 0)),   # lane-dense
        ),
        compiler_params=pltpu.CompilerParams(**cp_kwargs),
    )(consts, w_s, b_s, x_planes)

    return out2d.reshape(R * LANES, 1)


def composite_set_forward(x, w, b, params, *, target_bs=512, input_dtype=jnp.float32):
    """Module-native entry: x is [B, D] (as in Composite_Set.forward).

    Performs one transpose+pad HBM copy into feature-major planes (pad only to
    the 128-lane granularity); producers that can emit [D, R, 128] directly
    should call composite_set_forward_planes to skip that pass.
    """
    B, D = x.shape
    R = -(-B // LANES)
    Bp = R * LANES
    xt = jnp.transpose(x).astype(input_dtype)          # [D, B]
    xt = jnp.pad(xt, ((0, 0), (0, Bp - B)))            # fuses with the transpose
    xr = xt.reshape(D, R, LANES)
    out = composite_set_forward_planes(xr, w, b, params, target_bs=target_bs)
    return out[:B]


def ref_forward(x, w, b, params):
    """Pure-JAX reference mirroring the PyTorch get_lower_bound semantics."""
    vals = jnp.dot(x, w, precision=jax.lax.Precision.HIGHEST) + b
    sp = jax.nn.softplus(params)

    def lse2(a, bb, k):
        ka, kb = k * a, k * bb
        m = jnp.maximum(ka, kb)
        return (m + jnp.log(jnp.exp(ka - m) + jnp.exp(kb - m))) / k

    lb0 = lse2(vals[:, 0:1], vals[:, 1:2], sp[0, 2]) - jnp.log(2.0) / sp[0, 2]
    lb1 = lse2(vals[:, 2:3], vals[:, 3:4], sp[0, 3]) - jnp.log(2.0) / sp[0, 3]
    lb2 = vals[:, 4:5]
    lb = lse2(lb0, lb1, -sp[0, 0])
    lb = lse2(lb, lb2, -sp[0, 1])
    return lb


if __name__ == "__main__":
    key = jax.random.PRNGKey(0)
    B, D = 2000, 8                       # non-multiple of 128 -> exercises padding
    kx, kw, kb = jax.random.split(key, 3)
    x = jax.random.normal(kx, (B, D), dtype=jnp.float32)
    w = jax.random.normal(kw, (D, N_LEAVES), dtype=jnp.float32)
    b = jax.random.normal(kb, (1, N_LEAVES), dtype=jnp.float32)

    # Deterministic param init (module __init__: param * torch.ones(1, num_inputs-1)):
    # root AND param=0.5 (2 entries), each OR child param=0.0 (1 entry each).
    params = jnp.array([[0.5, 0.5, 0.0, 0.0]], dtype=jnp.float32)

    ref = ref_forward(x, w, b, params)

    # 1) module-native [B, D] entry (transpose+pad done once in the wrapper);
    #    planner clamps the 512-row target tile and keeps a 2-step grid here.
    out = composite_set_forward(x, w, b, params)
    jax.block_until_ready(out)
    assert out.shape == (B, 1)
    assert jnp.allclose(out, ref, atol=1e-4, rtol=1e-4), (out, ref)

    # 2) layout-preserving entry: producer emits feature-major planes directly,
    #    so no extra transpose HBM pass is needed inside the forward.
    Bp = -(-B // LANES) * LANES
    xr = jnp.pad(x.T, ((0, 0), (0, Bp - B))).reshape(D, Bp // LANES, LANES)
    out2 = composite_set_forward_planes(xr, w, b, params)[:B]
    jax.block_until_ready(out2)
    assert jnp.allclose(out2, ref, atol=1e-4, rtol=1e-4), (out2, ref)

    print("KERNEL_OK")
</pallas_src>

<mosaic_0001>
module attributes {stable_mosaic.version = 11 : i64} {
  func.func @composite_set_kernel(%arg0: i32, %arg1: memref<8xf32, #tpu.memory_space<smem>>, %arg2: memref<8x5xf32, #tpu.memory_space<smem>>, %arg3: memref<1x5xf32, #tpu.memory_space<smem>>, %arg4: memref<8x8x128xf32, #tpu.memory_space<vmem>>, %arg5: memref<8x128xf32, #tpu.memory_space<vmem>>) attributes {dimension_semantics = [#tpu.dimension_semantics<parallel>], iteration_bounds = array<i64: 2>, scalar_prefetch = 0 : i64, scratch_operands = 0 : i64, tpu.core_type = #tpu.core_type<tc>, window_params = [{transform_indices = @transform_0, window_bounds = array<i64: 8>}, {transform_indices = @transform_1, window_bounds = array<i64: 8, 5>}, {transform_indices = @transform_2, window_bounds = array<i64: 1, 5>}, {transform_indices = @transform_3, window_bounds = array<i64: 8, 8, 128>}, {transform_indices = @transform_4, window_bounds = array<i64: 8, 128>}]} {
    %c0 = arith.constant 0 : index
    %c0_0 = arith.constant 0 : index
    %c0_1 = arith.constant 0 : index
    %0 = vector.load %arg4[%c0, %c0_0, %c0_1] : memref<8x8x128xf32, #tpu.memory_space<vmem>>, vector<1x8x128xf32>
    %1 = vector.shape_cast %0 : vector<1x8x128xf32> to vector<8x128xf32>
    %c0_2 = arith.constant 0 : index
    %c0_3 = arith.constant 0 : index
    %2 = memref.load %arg2[%c0_2, %c0_3] : memref<8x5xf32, #tpu.memory_space<smem>>
    %3 = vector.broadcast %2 : f32 to vector<8x128xf32>
    %4 = arith.mulf %1, %3 : vector<8x128xf32>
    %c0_4 = arith.constant 0 : index
    %c0_5 = arith.constant 0 : index
    %5 = memref.load %arg3[%c0_4, %c0_5] : memref<1x5xf32, #tpu.memory_space<smem>>
    %6 = vector.broadcast %5 : f32 to vector<8x128xf32>
    %7 = arith.addf %4, %6 : vector<8x128xf32>
    %c0_6 = arith.constant 0 : index
    %c1 = arith.constant 1 : index
    %8 = memref.load %arg2[%c0_6, %c1] : memref<8x5xf32, #tpu.memory_space<smem>>
    %9 = vector.broadcast %8 : f32 to vector<8x128xf32>
    %10 = arith.mulf %1, %9 : vector<8x128xf32>
    %c0_7 = arith.constant 0 : index
    %c1_8 = arith.constant 1 : index
    %11 = memref.load %arg3[%c0_7, %c1_8] : memref<1x5xf32, #tpu.memory_space<smem>>
    %12 = vector.broadcast %11 : f32 to vector<8x128xf32>
    %13 = arith.addf %10, %12 : vector<8x128xf32>
    %c0_9 = arith.constant 0 : index
    %c2 = arith.constant 2 : index
    %14 = memref.load %arg2[%c0_9, %c2] : memref<8x5xf32, #tpu.memory_space<smem>>
    %15 = vector.broadcast %14 : f32 to vector<8x128xf32>
    %16 = arith.mulf %1, %15 : vector<8x128xf32>
    %c0_10 = arith.constant 0 : index
    %c2_11 = arith.constant 2 : index
    %17 = memref.load %arg3[%c0_10, %c2_11] : memref<1x5xf32, #tpu.memory_space<smem>>
    %18 = vector.broadcast %17 : f32 to vector<8x128xf32>
    %19 = arith.addf %16, %18 : vector<8x128xf32>
    %c0_12 = arith.constant 0 : index
    %c3 = arith.constant 3 : index
    %20 = memref.load %arg2[%c0_12, %c3] : memref<8x5xf32, #tpu.memory_space<smem>>
    %21 = vector.broadcast %20 : f32 to vector<8x128xf32>
    %22 = arith.mulf %1, %21 : vector<8x128xf32>
    %c0_13 = arith.constant 0 : index
    %c3_14 = arith.constant 3 : index
    %23 = memref.load %arg3[%c0_13, %c3_14] : memref<1x5xf32, #tpu.memory_space<smem>>
    %24 = vector.broadcast %23 : f32 to vector<8x128xf32>
    %25 = arith.addf %22, %24 : vector<8x128xf32>
    %c0_15 = arith.constant 0 : index
    %c4 = arith.constant 4 : index
    %26 = memref.load %arg2[%c0_15, %c4] : memref<8x5xf32, #tpu.memory_space<smem>>
    %27 = vector.broadcast %26 : f32 to vector<8x128xf32>
    %28 = arith.mulf %1, %27 : vector<8x128xf32>
    %c0_16 = arith.constant 0 : index
    %c4_17 = arith.constant 4 : index
    %29 = memref.load %arg3[%c0_16, %c4_17] : memref<1x5xf32, #tpu.memory_space<smem>>
    %30 = vector.broadcast %29 : f32 to vector<8x128xf32>
    %31 = arith.addf %28, %30 : vector<8x128xf32>
    %c1_18 = arith.constant 1 : index
    %c0_19 = arith.constant 0 : index
    %c0_20 = arith.constant 0 : index
    %32 = vector.load %arg4[%c1_18, %c0_19, %c0_20] : memref<8x8x128xf32, #tpu.memory_space<vmem>>, vector<1x8x128xf32>
    %33 = vector.shape_cast %32 : vector<1x8x128xf32> to vector<8x128xf32>
    %c1_21 = arith.constant 1 : index
    %c0_22 = arith.constant 0 : index
    %34 = memref.load %arg2[%c1_21, %c0_22] : memref<8x5xf32, #tpu.memory_space<smem>>
    %35 = vector.broadcast %34 : f32 to vector<8x128xf32>
    %36 = arith.mulf %33, %35 : vector<8x128xf32>
    %37 = arith.addf %7, %36 : vector<8x128xf32>
    %c1_23 = arith.constant 1 : index
    %c1_24 = arith.constant 1 : index
    %38 = memref.load %arg2[%c1_23, %c1_24] : memref<8x5xf32, #tpu.memory_space<smem>>
    %39 = vector.broadcast %38 : f32 to vector<8x128xf32>
    %40 = arith.mulf %33, %39 : vector<8x128xf32>
    %41 = arith.addf %13, %40 : vector<8x128xf32>
    %c1_25 = arith.constant 1 : index
    %c2_26 = arith.constant 2 : index
    %42 = memref.load %arg2[%c1_25, %c2_26] : memref<8x5xf32, #tpu.memory_space<smem>>
    %43 = vector.broadcast %42 : f32 to vector<8x128xf32>
    %44 = arith.mulf %33, %43 : vector<8x128xf32>
    %45 = arith.addf %19, %44 : vector<8x128xf32>
    %c1_27 = arith.constant 1 : index
    %c3_28 = arith.constant 3 : index
    %46 = memref.load %arg2[%c1_27, %c3_28] : memref<8x5xf32, #tpu.memory_space<smem>>
    %47 = vector.broadcast %46 : f32 to vector<8x128xf32>
    %48 = arith.mulf %33, %47 : vector<8x128xf32>
    %49 = arith.addf %25, %48 : vector<8x128xf32>
    %c1_29 = arith.constant 1 : index
    %c4_30 = arith.constant 4 : index
    %50 = memref.load %arg2[%c1_29, %c4_30] : memref<8x5xf32, #tpu.memory_space<smem>>
    %51 = vector.broadcast %50 : f32 to vector<8x128xf32>
    %52 = arith.mulf %33, %51 : vector<8x128xf32>
    %53 = arith.addf %31, %52 : vector<8x128xf32>
    %c2_31 = arith.constant 2 : index
    %c0_32 = arith.constant 0 : index
    %c0_33 = arith.constant 0 : index
    %54 = vector.load %arg4[%c2_31, %c0_32, %c0_33] : memref<8x8x128xf32, #tpu.memory_space<vmem>>, vector<1x8x128xf32>
    %55 = vector.shape_cast %54 : vector<1x8x128xf32> to vector<8x128xf32>
    %c2_34 = arith.constant 2 : index
    %c0_35 = arith.constant 0 : index
    %56 = memref.load %arg2[%c2_34, %c0_35] : memref<8x5xf32, #tpu.memory_space<smem>>
    %57 = vector.broadcast %56 : f32 to vector<8x128xf32>
    %58 = arith.mulf %55, %57 : vector<8x128xf32>
    %59 = arith.addf %37, %58 : vector<8x128xf32>
    %c2_36 = arith.constant 2 : index
    %c1_37 = arith.constant 1 : index
    %60 = memref.load %arg2[%c2_36, %c1_37] : memref<8x5xf32, #tpu.memory_space<smem>>
    %61 = vector.broadcast %60 : f32 to vector<8x128xf32>
    %62 = arith.mulf %55, %61 : vector<8x128xf32>
    %63 = arith.addf %41, %62 : vector<8x128xf32>
    %c2_38 = arith.constant 2 : index
    %c2_39 = arith.constant 2 : index
    %64 = memref.load %arg2[%c2_38, %c2_39] : memref<8x5xf32, #tpu.memory_space<smem>>
    %65 = vector.broadcast %64 : f32 to vector<8x128xf32>
    %66 = arith.mulf %55, %65 : vector<8x128xf32>
    %67 = arith.addf %45, %66 : vector<8x128xf32>
    %c2_40 = arith.constant 2 : index
    %c3_41 = arith.constant 3 : index
    %68 = memref.load %arg2[%c2_40, %c3_41] : memref<8x5xf32, #tpu.memory_space<smem>>
    %69 = vector.broadcast %68 : f32 to vector<8x128xf32>
    %70 = arith.mulf %55, %69 : vector<8x128xf32>
    %71 = arith.addf %49, %70 : vector<8x128xf32>
    %c2_42 = arith.constant 2 : index
    %c4_43 = arith.constant 4 : index
    %72 = memref.load %arg2[%c2_42, %c4_43] : memref<8x5xf32, #tpu.memory_space<smem>>
    %73 = vector.broadcast %72 : f32 to vector<8x128xf32>
    %74 = arith.mulf %55, %73 : vector<8x128xf32>
    %75 = arith.addf %53, %74 : vector<8x128xf32>
    %c3_44 = arith.constant 3 : index
    %c0_45 = arith.constant 0 : index
    %c0_46 = arith.constant 0 : index
    %76 = vector.load %arg4[%c3_44, %c0_45, %c0_46] : memref<8x8x128xf32, #tpu.memory_space<vmem>>, vector<1x8x128xf32>
    %77 = vector.shape_cast %76 : vector<1x8x128xf32> to vector<8x128xf32>
    %c3_47 = arith.constant 3 : index
    %c0_48 = arith.constant 0 : index
    %78 = memref.load %arg2[%c3_47, %c0_48] : memref<8x5xf32, #tpu.memory_space<smem>>
    %79 = vector.broadcast %78 : f32 to vector<8x128xf32>
    %80 = arith.mulf %77, %79 : vector<8x128xf32>
    %81 = arith.addf %59, %80 : vector<8x128xf32>
    %c3_49 = arith.constant 3 : index
    %c1_50 = arith.constant 1 : index
    %82 = memref.load %arg2[%c3_49, %c1_50] : memref<8x5xf32, #tpu.memory_space<smem>>
    %83 = vector.broadcast %82 : f32 to vector<8x128xf32>
    %84 = arith.mulf %77, %83 : vector<8x128xf32>
    %85 = arith.addf %63, %84 : vector<8x128xf32>
    %c3_51 = arith.constant 3 : index
    %c2_52 = arith.constant 2 : index
    %86 = memref.load %arg2[%c3_51, %c2_52] : memref<8x5xf32, #tpu.memory_space<smem>>
    %87 = vector.broadcast %86 : f32 to vector<8x128xf32>
    %88 = arith.mulf %77, %87 : vector<8x128xf32>
    %89 = arith.addf %67, %88 : vector<8x128xf32>
    %c3_53 = arith.constant 3 : index
    %c3_54 = arith.constant 3 : index
    %90 = memref.load %arg2[%c3_53, %c3_54] : memref<8x5xf32, #tpu.memory_space<smem>>
    %91 = vector.broadcast %90 : f32 to vector<8x128xf32>
    %92 = arith.mulf %77, %91 : vector<8x128xf32>
    %93 = arith.addf %71, %92 : vector<8x128xf32>
    %c3_55 = arith.constant 3 : index
    %c4_56 = arith.constant 4 : index
    %94 = memref.load %arg2[%c3_55, %c4_56] : memref<8x5xf32, #tpu.memory_space<smem>>
    %95 = vector.broadcast %94 : f32 to vector<8x128xf32>
    %96 = arith.mulf %77, %95 : vector<8x128xf32>
    %97 = arith.addf %75, %96 : vector<8x128xf32>
    %c4_57 = arith.constant 4 : index
    %c0_58 = arith.constant 0 : index
    %c0_59 = arith.constant 0 : index
    %98 = vector.load %arg4[%c4_57, %c0_58, %c0_59] : memref<8x8x128xf32, #tpu.memory_space<vmem>>, vector<1x8x128xf32>
    %99 = vector.shape_cast %98 : vector<1x8x128xf32> to vector<8x128xf32>
    %c4_60 = arith.constant 4 : index
    %c0_61 = arith.constant 0 : index
    %100 = memref.load %arg2[%c4_60, %c0_61] : memref<8x5xf32, #tpu.memory_space<smem>>
    %101 = vector.broadcast %100 : f32 to vector<8x128xf32>
    %102 = arith.mulf %99, %101 : vector<8x128xf32>
    %103 = arith.addf %81, %102 : vector<8x128xf32>
    %c4_62 = arith.constant 4 : index
    %c1_63 = arith.constant 1 : index
    %104 = memref.load %arg2[%c4_62, %c1_63] : memref<8x5xf32, #tpu.memory_space<smem>>
    %105 = vector.broadcast %104 : f32 to vector<8x128xf32>
    %106 = arith.mulf %99, %105 : vector<8x128xf32>
    %107 = arith.addf %85, %106 : vector<8x128xf32>
    %c4_64 = arith.constant 4 : index
    %c2_65 = arith.constant 2 : index
    %108 = memref.load %arg2[%c4_64, %c2_65] : memref<8x5xf32, #tpu.memory_space<smem>>
    %109 = vector.broadcast %108 : f32 to vector<8x128xf32>
    %110 = arith.mulf %99, %109 : vector<8x128xf32>
    %111 = arith.addf %89, %110 : vector<8x128xf32>
    %c4_66 = arith.constant 4 : index
    %c3_67 = arith.constant 3 : index
    %112 = memref.load %arg2[%c4_66, %c3_67] : memref<8x5xf32, #tpu.memory_space<smem>>
    %113 = vector.broadcast %112 : f32 to vector<8x128xf32>
    %114 = arith.mulf %99, %113 : vector<8x128xf32>
    %115 = arith.addf %93, %114 : vector<8x128xf32>
    %c4_68 = arith.constant 4 : index
    %c4_69 = arith.constant 4 : index
    %116 = memref.load %arg2[%c4_68, %c4_69] : memref<8x5xf32, #tpu.memory_space<smem>>
    %117 = vector.broadcast %116 : f32 to vector<8x128xf32>
    %118 = arith.mulf %99, %117 : vector<8x128xf32>
    %119 = arith.addf %97, %118 : vector<8x128xf32>
    %c5 = arith.constant 5 : index
    %c0_70 = arith.constant 0 : index
    %c0_71 = arith.constant 0 : index
    %120 = vector.load %arg4[%c5, %c0_70, %c0_71] : memref<8x8x128xf32, #tpu.memory_space<vmem>>, vector<1x8x128xf32>
    %121 = vector.shape_cast %120 : vector<1x8x128xf32> to vector<8x128xf32>
    %c5_72 = arith.constant 5 : index
    %c0_73 = arith.constant 0 : index
    %122 = memref.load %arg2[%c5_72, %c0_73] : memref<8x5xf32, #tpu.memory_space<smem>>
    %123 = vector.broadcast %122 : f32 to vector<8x128xf32>
    %124 = arith.mulf %121, %123 : vector<8x128xf32>
    %125 = arith.addf %103, %124 : vector<8x128xf32>
    %c5_74 = arith.constant 5 : index
    %c1_75 = arith.constant 1 : index
    %126 = memref.load %arg2[%c5_74, %c1_75] : memref<8x5xf32, #tpu.memory_space<smem>>
    %127 = vector.broadcast %126 : f32 to vector<8x128xf32>
    %128 = arith.mulf %121, %127 : vector<8x128xf32>
    %129 = arith.addf %107, %128 : vector<8x128xf32>
    %c5_76 = arith.constant 5 : index
    %c2_77 = arith.constant 2 : index
    %130 = memref.load %arg2[%c5_76, %c2_77] : memref<8x5xf32, #tpu.memory_space<smem>>
    %131 = vector.broadcast %130 : f32 to vector<8x128xf32>
    %132 = arith.mulf %121, %131 : vector<8x128xf32>
    %133 = arith.addf %111, %132 : vector<8x128xf32>
    %c5_78 = arith.constant 5 : index
    %c3_79 = arith.constant 3 : index
    %134 = memref.load %arg2[%c5_78, %c3_79] : memref<8x5xf32, #tpu.memory_space<smem>>
    %135 = vector.broadcast %134 : f32 to vector<8x128xf32>
    %136 = arith.mulf %121, %135 : vector<8x128xf32>
    %137 = arith.addf %115, %136 : vector<8x128xf32>
    %c5_80 = arith.constant 5 : index
    %c4_81 = arith.constant 4 : index
    %138 = memref.load %arg2[%c5_80, %c4_81] : memref<8x5xf32, #tpu.memory_space<smem>>
    %139 = vector.broadcast %138 : f32 to vector<8x128xf32>
    %140 = arith.mulf %121, %139 : vector<8x128xf32>
    %141 = arith.addf %119, %140 : vector<8x128xf32>
    %c6 = arith.constant 6 : index
    %c0_82 = arith.constant 0 : index
    %c0_83 = arith.constant 0 : index
    %142 = vector.load %arg4[%c6, %c0_82, %c0_83] : memref<8x8x128xf32, #tpu.memory_space<vmem>>, vector<1x8x128xf32>
    %143 = vector.shape_cast %142 : vector<1x8x128xf32> to vector<8x128xf32>
    %c6_84 = arith.constant 6 : index
    %c0_85 = arith.constant 0 : index
    %144 = memref.load %arg2[%c6_84, %c0_85] : memref<8x5xf32, #tpu.memory_space<smem>>
    %145 = vector.broadcast %144 : f32 to vector<8x128xf32>
    %146 = arith.mulf %143, %145 : vector<8x128xf32>
    %147 = arith.addf %125, %146 : vector<8x128xf32>
    %c6_86 = arith.constant 6 : index
    %c1_87 = arith.constant 1 : index
    %148 = memref.load %arg2[%c6_86, %c1_87] : memref<8x5xf32, #tpu.memory_space<smem>>
    %149 = vector.broadcast %148 : f32 to vector<8x128xf32>
    %150 = arith.mulf %143, %149 : vector<8x128xf32>
    %151 = arith.addf %129, %150 : vector<8x128xf32>
    %c6_88 = arith.constant 6 : index
    %c2_89 = arith.constant 2 : index
    %152 = memref.load %arg2[%c6_88, %c2_89] : memref<8x5xf32, #tpu.memory_space<smem>>
    %153 = vector.broadcast %152 : f32 to vector<8x128xf32>
    %154 = arith.mulf %143, %153 : vector<8x128xf32>
    %155 = arith.addf %133, %154 : vector<8x128xf32>
    %c6_90 = arith.constant 6 : index
    %c3_91 = arith.constant 3 : index
    %156 = memref.load %arg2[%c6_90, %c3_91] : memref<8x5xf32, #tpu.memory_space<smem>>
    %157 = vector.broadcast %156 : f32 to vector<8x128xf32>
    %158 = arith.mulf %143, %157 : vector<8x128xf32>
    %159 = arith.addf %137, %158 : vector<8x128xf32>
    %c6_92 = arith.constant 6 : index
    %c4_93 = arith.constant 4 : index
    %160 = memref.load %arg2[%c6_92, %c4_93] : memref<8x5xf32, #tpu.memory_space<smem>>
    %161 = vector.broadcast %160 : f32 to vector<8x128xf32>
    %162 = arith.mulf %143, %161 : vector<8x128xf32>
    %163 = arith.addf %141, %162 : vector<8x128xf32>
    %c7 = arith.constant 7 : index
    %c0_94 = arith.constant 0 : index
    %c0_95 = arith.constant 0 : index
    %164 = vector.load %arg4[%c7, %c0_94, %c0_95] : memref<8x8x128xf32, #tpu.memory_space<vmem>>, vector<1x8x128xf32>
    %165 = vector.shape_cast %164 : vector<1x8x128xf32> to vector<8x128xf32>
    %c7_96 = arith.constant 7 : index
    %c0_97 = arith.constant 0 : index
    %166 = memref.load %arg2[%c7_96, %c0_97] : memref<8x5xf32, #tpu.memory_space<smem>>
    %167 = vector.broadcast %166 : f32 to vector<8x128xf32>
    %168 = arith.mulf %165, %167 : vector<8x128xf32>
    %169 = arith.addf %147, %168 : vector<8x128xf32>
    %c7_98 = arith.constant 7 : index
    %c1_99 = arith.constant 1 : index
    %170 = memref.load %arg2[%c7_98, %c1_99] : memref<8x5xf32, #tpu.memory_space<smem>>
    %171 = vector.broadcast %170 : f32 to vector<8x128xf32>
    %172 = arith.mulf %165, %171 : vector<8x128xf32>
    %173 = arith.addf %151, %172 : vector<8x128xf32>
    %c7_100 = arith.constant 7 : index
    %c2_101 = arith.constant 2 : index
    %174 = memref.load %arg2[%c7_100, %c2_101] : memref<8x5xf32, #tpu.memory_space<smem>>
    %175 = vector.broadcast %174 : f32 to vector<8x128xf32>
    %176 = arith.mulf %165, %175 : vector<8x128xf32>
    %177 = arith.addf %155, %176 : vector<8x128xf32>
    %c7_102 = arith.constant 7 : index
    %c3_103 = arith.constant 3 : index
    %178 = memref.load %arg2[%c7_102, %c3_103] : memref<8x5xf32, #tpu.memory_space<smem>>
    %179 = vector.broadcast %178 : f32 to vector<8x128xf32>
    %180 = arith.mulf %165, %179 : vector<8x128xf32>
    %181 = arith.addf %159, %180 : vector<8x128xf32>
    %c7_104 = arith.constant 7 : index
    %c4_105 = arith.constant 4 : index
    %182 = memref.load %arg2[%c7_104, %c4_105] : memref<8x5xf32, #tpu.memory_space<smem>>
    %183 = vector.broadcast %182 : f32 to vector<8x128xf32>
    %184 = arith.mulf %165, %183 : vector<8x128xf32>
    %185 = arith.addf %163, %184 : vector<8x128xf32>
    %c0_106 = arith.constant 0 : index
    %186 = memref.load %arg1[%c0_106] : memref<8xf32, #tpu.memory_space<smem>>
    %c1_107 = arith.constant 1 : index
    %187 = memref.load %arg1[%c1_107] : memref<8xf32, #tpu.memory_space<smem>>
    %c2_108 = arith.constant 2 : index
    %188 = memref.load %arg1[%c2_108] : memref<8xf32, #tpu.memory_space<smem>>
    %c3_109 = arith.constant 3 : index
    %189 = memref.load %arg1[%c3_109] : memref<8xf32, #tpu.memory_space<smem>>
    %c4_110 = arith.constant 4 : index
    %190 = memref.load %arg1[%c4_110] : memref<8xf32, #tpu.memory_space<smem>>
    %c5_111 = arith.constant 5 : index
    %191 = memref.load %arg1[%c5_111] : memref<8xf32, #tpu.memory_space<smem>>
    %c6_112 = arith.constant 6 : index
    %192 = memref.load %arg1[%c6_112] : memref<8xf32, #tpu.memory_space<smem>>
    %c7_113 = arith.constant 7 : index
    %193 = memref.load %arg1[%c7_113] : memref<8xf32, #tpu.memory_space<smem>>
    %194 = arith.maximumf %169, %173 : vector<8x128xf32>
    %195 = arith.subf %169, %173 : vector<8x128xf32>
    %196 = math.absf %195 : vector<8x128xf32>
    %cst = arith.constant 0.000000e+00 : f32
    %197 = vector.broadcast %cst : f32 to vector<8x128xf32>
    %198 = arith.subf %197, %196 : vector<8x128xf32>
    %199 = math.exp %198 : vector<8x128xf32>
    %cst_114 = arith.constant 1.000000e+00 : f32
    %200 = vector.broadcast %cst_114 : f32 to vector<8x128xf32>
    %201 = arith.addf %200, %199 : vector<8x128xf32>
    %202 = math.log %201 : vector<8x128xf32>
    %203 = arith.addf %194, %202 : vector<8x128xf32>
    %204 = vector.broadcast %186 : f32 to vector<8x128xf32>
    %205 = arith.mulf %203, %204 : vector<8x128xf32>
    %206 = vector.broadcast %187 : f32 to vector<8x128xf32>
    %207 = arith.subf %205, %206 : vector<8x128xf32>
    %208 = arith.maximumf %177, %181 : vector<8x128xf32>
    %209 = arith.subf %177, %181 : vector<8x128xf32>
    %210 = math.absf %209 : vector<8x128xf32>
    %cst_115 = arith.constant 0.000000e+00 : f32
    %211 = vector.broadcast %cst_115 : f32 to vector<8x128xf32>
    %212 = arith.subf %211, %210 : vector<8x128xf32>
    %213 = math.exp %212 : vector<8x128xf32>
    %cst_116 = arith.constant 1.000000e+00 : f32
    %214 = vector.broadcast %cst_116 : f32 to vector<8x128xf32>
    %215 = arith.addf %214, %213 : vector<8x128xf32>
    %216 = math.log %215 : vector<8x128xf32>
    %217 = arith.addf %208, %216 : vector<8x128xf32>
    %218 = vector.broadcast %188 : f32 to vector<8x128xf32>
    %219 = arith.mulf %217, %218 : vector<8x128xf32>
    %220 = vector.broadcast %189 : f32 to vector<8x128xf32>
    %221 = arith.subf %219, %220 : vector<8x128xf32>
    %222 = vector.broadcast %190 : f32 to vector<8x128xf32>
    %223 = arith.mulf %222, %207 : vector<8x128xf32>
    %224 = vector.broadcast %190 : f32 to vector<8x128xf32>
    %225 = arith.mulf %224, %221 : vector<8x128xf32>
    %226 = arith.maximumf %223, %225 : vector<8x128xf32>
    %227 = arith.subf %223, %225 : vector<8x128xf32>
    %228 = math.absf %227 : vector<8x128xf32>
    %cst_117 = arith.constant 0.000000e+00 : f32
    %229 = vector.broadcast %cst_117 : f32 to vector<8x128xf32>
    %230 = arith.subf %229, %228 : vector<8x128xf32>
    %231 = math.exp %230 : vector<8x128xf32>
    %cst_118 = arith.constant 1.000000e+00 : f32
    %232 = vector.broadcast %cst_118 : f32 to vector<8x128xf32>
    %233 = arith.addf %232, %231 : vector<8x128xf32>
    %234 = math.log %233 : vector<8x128xf32>
    %235 = arith.addf %226, %234 : vector<8x128xf32>
    %236 = vector.broadcast %191 : f32 to vector<8x128xf32>
    %237 = arith.mulf %235, %236 : vector<8x128xf32>
    %cst_119 = arith.constant 0.000000e+00 : f32
    %238 = vector.broadcast %cst_119 : f32 to vector<8x128xf32>
    %239 = arith.subf %237, %238 : vector<8x128xf32>
    %240 = vector.broadcast %192 : f32 to vector<8x128xf32>
    %241 = arith.mulf %240, %239 : vector<8x128xf32>
    %242 = vector.broadcast %192 : f32 to vector<8x128xf32>
    %243 = arith.mulf %242, %185 : vector<8x128xf32>
    %244 = arith.maximumf %241, %243 : vector<8x128xf32>
    %245 = arith.subf %241, %243 : vector<8x128xf32>
    %246 = math.absf %245 : vector<8x128xf32>
    %cst_120 = arith.constant 0.000000e+00 : f32
    %247 = vector.broadcast %cst_120 : f32 to vector<8x128xf32>
    %248 = arith.subf %247, %246 : vector<8x128xf32>
    %249 = math.exp %248 : vector<8x128xf32>
    %cst_121 = arith.constant 1.000000e+00 : f32
    %250 = vector.broadcast %cst_121 : f32 to vector<8x128xf32>
    %251 = arith.addf %250, %249 : vector<8x128xf32>
    %252 = math.log %251 : vector<8x128xf32>
    %253 = arith.addf %244, %252 : vector<8x128xf32>
    %254 = vector.broadcast %193 : f32 to vector<8x128xf32>
    %255 = arith.mulf %253, %254 : vector<8x128xf32>
    %cst_122 = arith.constant 0.000000e+00 : f32
    %256 = vector.broadcast %cst_122 : f32 to vector<8x128xf32>
    %257 = arith.subf %255, %256 : vector<8x128xf32>
    %c0_123 = arith.constant 0 : index
    %c0_124 = arith.constant 0 : index
    %258 = vector.load %arg5[%c0_123, %c0_124] : memref<8x128xf32, #tpu.memory_space<vmem>>, vector<8x128xf32>
    tpu.vector_store %arg5[%c0_123, %c0_124], %257 {strides = array<i32>} : memref<8x128xf32, #tpu.memory_space<vmem>>, vector<8x128xf32>,
    return
  }
  func.func @transform_0(%arg0: i32) -> i32 {
    %c0_i32 = arith.constant 0 : i32
    %c0_i32_0 = arith.constant 0 : i32
    return %c0_i32 : i32
  }
  func.func @transform_1(%arg0: i32) -> (i32, i32) {
    %c0_i32 = arith.constant 0 : i32
    %c0_i32_0 = arith.constant 0 : i32
    %c0_i32_1 = arith.constant 0 : i32
    return %c0_i32, %c0_i32_0 : i32, i32
  }
  func.func @transform_2(%arg0: i32) -> (i32, i32) {
    %c0_i32 = arith.constant 0 : i32
    %c0_i32_0 = arith.constant 0 : i32
    %c0_i32_1 = arith.constant 0 : i32
    return %c0_i32, %c0_i32_0 : i32, i32
  }
  func.func @transform_3(%arg0: i32) -> (i32, i32, i32) {
    %c0_i32 = arith.constant 0 : i32
    %c0_i32_0 = arith.constant 0 : i32
    %c0_i32_1 = arith.constant 0 : i32
    return %c0_i32, %arg0, %c0_i32_0 : i32, i32, i32
  }
  func.func @transform_4(%arg0: i32) -> (i32, i32) {
    %c0_i32 = arith.constant 0 : i32
    %c0_i32_0 = arith.constant 0 : i32
    return %arg0, %c0_i32 : i32, i32
  }
}

</mosaic_0001>

<bundles_post_ra>
// kernel: tpu_custom_call.1
= control target key start
LH: loop header
LB: loop body
LE: loop exit
PB: predicated region body
PF: predicated region fallthrough
CT: control target
= control target key end

     0   :  { %s1225_s0 = inlined_call_operand.hbm [shape: f32[8], index: 0, kind: input, shape index: {}]   ;;  %s1226_s1 = inlined_call_operand.hbm [shape: f32[8,5], index: 1, kind: input, shape index: {}]   ;;  %s1227_s2 = inlined_call_operand.vmem [shape: f32[1,5], index: 2, kind: input, shape index: {}]   ;;  %s1228_s3 = inlined_call_operand.hbm [shape: f32[8,16,128], index: 3, kind: input, shape index: {}]   ;;  %s1229_s4 = inlined_call_operand.hbm [shape: f32[16,128], index: 4, kind: output, shape index: {}]  }
   0x1   :  { %1230 = sst [smem:[#allocation17_spill]] %s1225_s0 }
   0x2   :  { %1231 = sst [smem:[#allocation18_spill]] %s1226_s1 }
   0x3   :  { %9 = vsyncpa [#allocation5], 0 }
   0x4   :  { %10 = vsyncpa [#allocation8], 0 }
   0x5   :  { %11 = vsyncpa [#allocation6], 0 }
   0x6   :  { %12 = vsyncpa [#allocation3], 0 }
   0x7   :  { %14 = vsyncpa [#allocation3 + $0x1], 0 }
   0x8   :  { %15 = vsyncpa [#allocation4], 0 }
   0x9   :  { %17 = vsyncpa [#allocation4 + $0x1], 0  ;;  %s986_s15 = smov 0   ;;  %s988_s16 = smov 0  }
   0xa   :  { %s990_s17 = smov 0   ;;  %s992_s18 = smov 0  }
   0xb LB: > { %s1007_s19 = sadd.s32 4294967295, %s953_s18   ;;  %s629_s20 = sadd.s32 4294967294, %s953_s18   ;;  %s953_s18 = sphi %s992_s18, %s1244_s18   ;;  %s949_s17 = sphi %s990_s17, %s1243_s17   ;;  %s945_s16 = sphi %s988_s16, %s1242_s16   ;;  %s941_s15 = sphi %s986_s15, %s1241_s15  }
   0xc   : > { %s1011_s21 = sadd.s32 1, %s953_s18   ;;  %s93_s22 = sadd.s32 1, %s949_s17 }
   0xd   : > { %s90_s23 = ssub.s32 %s953_s18, %s1011_s21  ;;  %p100_p0 = scmp.ne.s32.totalorder %s949_s17, %s945_s16 }
   0xe   : > { %p91_p1 = scmp.eq.s32.totalorder %s90_s23, 0  ;;  %p101_p2 = scmp.eq.s32.totalorder %s953_s18, 0 }
   0xf   : > { %p106_p3 = scmp.ne.s32.totalorder %s945_s16, %s941_s15  ;;  %p107_p4 = scmp.eq.s32.totalorder %s1007_s19, 0 }
  0x10   : > { %s1023_s24 = scalar_select %p91_p1, %s949_s17, %s93_s22  }
  0x11   : > { %p1025_p5 = por %p101_p2, %p100_p0  ;;  %p1031_p6 = por %p107_p4, %p106_p3 }
  0x12   : > { %p130_p7 = scmp.eq.s32.totalorder %s1007_s19, 1  ;;  %p136_p8 = scmp.eq.s32.totalorder %s629_s20, 1 }
  0x13   : > { %p630_p9 = scmp.ge.s32.totalorder %s953_s18, 1  ;;  %p143_p10 = scmp.lt.s32.totalorder %s953_s18, 3 }
  0x14   : > { %p1038_p11 = por %p130_p7, %p100_p0  ;;  %p1042_p12 = por %p136_p8, %p106_p3 }
  0x15   : > { %p1046_p13 = pnand %p630_p9, %p143_p10  ;;  %s1237_s0 = sld [smem:[#allocation17_spill]] }
  0x16   : > { %p741_p2 = scmp.lt.s32.totalorder %s953_s18, 2  ;;  %s1238_s1 = sld [smem:[#allocation18_spill]] }
  0x17   : > { %p720_p1 = pneg %p1046_p13  ;;  %s955_s11 = smov [#allocation2]  }
  0x18   : > { %p1064_p7 = pnand %p741_p2, %p1025_p5  ;;  %s175_s14 = sshll.u32 %s1227_s2, 4  ;;  %s176_s14 = int_to_ptr.vmem [resolvable:$true] %s175_s14 }
  0x19   : > { %p721_p3 = pnand %p720_p1, %p107_p4  ;;  %s956_s20 = smov [#allocation7]  }
  0x1a   : > { %s957_s22 = smov [#allocation9]   ;;  %s186_s23 = sand.u32 1, %s949_s17  }
  0x1b   : > { %s155_s6 = sshll.u32 %s1237_s0, 4  ;;  %s636_s30 = sshll.u32 %s953_s18, 3  ;;  %s156_s6 = int_to_ptr.hbm [resolvable:$true] %s155_s6 }
  0x1c   : > { %s165_s9 = sshll.u32 %s1238_s1, 4  ;;  %s635_s25 = sshll.u32 %s186_s23, 6  ;;  %s166_s9 = int_to_ptr.hbm [resolvable:$true] %s165_s9 }
  0x1d   : > { %723 = dma.hbm_to_smem (!%p721_p3), %s156_s6, 16, %s955_s11, [#allocation5]  }
  0x1e   : > { %726 = dma.hbm_to_smem (!%p721_p3), %s166_s9, 128, %s956_s20, [#allocation8]  }
  0x1f   : > { %729 = dma.vmem_to_smem (!%p721_p3), %s176_s14, 16, %s957_s22, [#allocation6]  }
  0x20   : > { %s194_s8 = scalar_lea.hbm %s1228_s3, %s636_s30  ;;  %s190_s1 = scalar_lea.vmem [#allocation10], %s635_s25 }
  0x21   : > { %s195_s0 = sshll.u32 %s194_s8, 4  ;;  %s197_s6 = sshll.u32 %s190_s1, 4  ;;  %s196_s0 = int_to_ptr.hbm [resolvable:$true] %s195_s0  ;;  %s198_s6 = int_to_ptr.vmem [resolvable:$true] %s197_s6 }
  0x22   : > { %s187_s11 = scalar_lea.sflag [#allocation3], %s186_s23  ;;  %s845_s12 = sshra.s32 %s196_s0, 4  ;;  %s846_s12 = int_to_ptr.hbm [resolvable:$true] %s845_s12 }
  0x23   : > { %s847_s9 = scalar_lea.hbm %s846_s12, 64  ;;  %p849_p8 = pneg %p1064_p7 }
  0x24   : > { %p848_p5 = scmp.ne.s32.totalorder %s846_s12, %s847_s9  ;;  %s852_s20 = scalar_lea.hbm %s1228_s3, 128 }
  0x25   : > { %p853_p1 = scmp.lt.s32.totalorder %s846_s12, %s1228_s3  ;;  %p854_p2 = scmp.lt.s32.totalorder %s852_s20, %s847_s9 }
  0x26   : > { %p850_p9 = pnand %p849_p8, %p848_p5 }
  0x27   : > { %p855_p3 = por %p854_p2, %p853_p1 }
  0x28   : > { %p851_p10 = pneg %p850_p9 }
  0x2a   : > { %p856_p0 = pnand %p855_p3, %p851_p10 }
  0x2c   : > { %859 = shalt.err (!%p856_p0)
}
  0x2d   : > { %s958_s1 = smov 256   ;;  %s959_s23 = smov 128  }
  0x2e   : > { %s960_s25 = smov 8   ;;  %209 = sbr.rel (%p1046_p13) target bundleno = 215 (0xd7), region = 36 }
  0x2f   : > { %733 = dma.hbm_to_vmem [thread:$0]  (!%p1064_p7), %s196_s0, 1024, %s198_s6, %s187_s11, %s958_s1, %s959_s23, %s960_s25  }
  0x33   : > { %920 = dma.done.wait (%p107_p4), [#allocation5], 16  }
  0x34   : > { %922 = vsyncadd (%p107_p4), [#allocation5], 4294967280 }
  0x35   : > { %924 = dma.done.wait (%p107_p4), [#allocation8], 128  }
  0x36   : > { %926 = vsyncadd (%p107_p4), [#allocation8], 4294967168 }
  0x37   : > { %928 = dma.done.wait (%p107_p4), [#allocation6], 16  }
  0x38   : > { %930 = vsyncadd (%p107_p4), [#allocation6], 4294967280  ;;  %s1101_s0 = sand.u32 1, %s945_s16  }
  0x39   : > { %s641_s29 = sshll.u32 %s1101_s0, 6  ;;  %s227_s10 = scalar_lea.sflag [#allocation3], %s1101_s0 }
  0x3a   : > { %s1105_s5 = scalar_lea.vmem [#allocation10], %s641_s29 }
  0x3b   : > { %932 = dma.done.wait (%p1031_p6), %s227_s10, 1024  }
  0x3c   : > { %934 = vsyncadd (%p1031_p6), %s227_s10, 4294966272 }
  0x3d   : > { %236 = sfence }
  0x3e   : > { %s258_s7 = sld [smem:[#allocation7]]  ;;  %v257_v0 = vld [vmem:[%s1105_s5] sm:$0xff]  ;;  %v651_v12 = vld [vmem:[%s1105_s5 + $0x8] sm:$0xff]  ;;  %v657_v28 = vld [vmem:[%s1105_s5 + $0x10] sm:$0xff] }
  0x3f   : > { %s261_s8 = sld [smem:[#allocation9]]  ;;  %v663_v44 = vld [vmem:[%s1105_s5 + $0x18] sm:$0xff]  ;;  %v669_v59 = vld [vmem:[%s1105_s5 + $0x20] sm:$0xff] }
  0x40   : > { %s643_s6 = sld [smem:[#allocation7 + $0x1]] }
  0x41   : > { %s1111_s11 = sld [smem:[#allocation9 + $0x1]] }
  0x42   : > { %s1113_s12 = sld [smem:[#allocation7 + $0x2]] }
  0x43   : > { %s1115_s9 = sld [smem:[#allocation9 + $0x2]] }
  0x44   : > { %s1117_s13 = sld [smem:[#allocation7 + $0x3]]  ;;  %v259_v1 = vstv %s258_s7 }
  0x45   : > { %s1119_s14 = sld [smem:[#allocation9 + $0x3]]  ;;  %v260_v2 = vmul.f32 %v259_v1, %v257_v0  ;;  %v262_v4 = vstv %s261_s8 }
  0x46   : > { %s649_s20 = sld [smem:[#allocation7 + $0x4]]  ;;  %v265_v5 = vstv %s643_s6 }
  0x47   : > { %s650_s22 = sld [smem:[#allocation9 + $0x4]]  ;;  %v263_v10 = vadd.f32 %v262_v4, %v260_v2  ;;  %v266_v11 = vmul.f32 %v265_v5, %v257_v0  ;;  %v268_v14 = vstv %s1111_s11 }
  0x48   : > { %s1121_s26 = sld [smem:[#allocation7 + $0x80]]  ;;  %v271_v7 = vstv %s1113_s12 }
  0x49   : > { %s1124_s30 = sld [smem:[#allocation7 + $0x81]]  ;;  %v272_v15 = vmul.f32 %v271_v7, %v257_v0  ;;  %v274_v18 = vstv %s1115_s9  ;;  %v269_v26 = vadd.f32 %v268_v14, %v266_v11 }
  0x4a   : > { %s1126_s1 = sld [smem:[#allocation7 + $0x82]]  ;;  %v277_v9 = vstv %s1117_s13 }
  0x4b   : > { %s1128_s23 = sld [smem:[#allocation7 + $0x83]]  ;;  %v278_v19 = vmul.f32 %v277_v9, %v257_v0  ;;  %v280_v22 = vstv %s1119_s14  ;;  %v275_v30 = vadd.f32 %v274_v18, %v272_v15 }
  0x4c   : > { %v283_v3 = vstv %s649_s20  ;;  %s656_s25 = sld [smem:[#allocation7 + $0x84]] }
  0x4d   : > { %v284_v6 = vmul.f32 %v283_v3, %v257_v0  ;;  %s1130_s29 = sld [smem:[#allocation7 + $0x100]]  ;;  %v286_v8 = vstv %s650_s22  ;;  %v281_v34 = vadd.f32 %v280_v22, %v278_v19 }
  0x4e   : > { %s1133_s10 = sld [smem:[#allocation7 + $0x101]]  ;;  %v291_v13 = vstv %s1121_s26 }
  0x4f   : > { %s1136_s7 = sld [smem:[#allocation7 + $0x102]]  ;;  %v287_v16 = vadd.f32 %v286_v8, %v284_v6  ;;  %v295_v17 = vstv %s1124_s30  ;;  %v292_v23 = vmul.f32 %v651_v12, %v291_v13 }
  0x50   : > { %s1140_s8 = sld [smem:[#allocation7 + $0x103]]  ;;  %v299_v20 = vstv %s1126_s1  ;;  %v296_v27 = vmul.f32 %v651_v12, %v295_v17 }
  0x51   : > { %s1144_s6 = sld [smem:[#allocation7 + $0x104]]  ;;  %v303_v24 = vstv %s1128_s23  ;;  %v300_v31 = vmul.f32 %v651_v12, %v299_v20  ;;  %v293_v37 = vadd.f32 %v292_v23, %v263_v10  ;;  %v675_v10 = vld [vmem:[%s1105_s5 + $0x28] sm:$0xff] }
  0x52   : > { %v307_v21 = vstv %s656_s25  ;;  %s1148_s12 = sld [smem:[#allocation7 + $0x180]]  ;;  %v304_v35 = vmul.f32 %v651_v12, %v303_v24  ;;  %v297_v41 = vadd.f32 %v296_v27, %v269_v26 }
  0x53   : > { %v308_v25 = vmul.f32 %v651_v12, %v307_v21  ;;  %s1152_s11 = sld [smem:[#allocation7 + $0x181]]  ;;  %v313_v29 = vstv %s1130_s29  ;;  %v301_v46 = vadd.f32 %v300_v31, %v275_v30 }
  0x54   : > { %s1156_s9 = sld [smem:[#allocation7 + $0x182]]  ;;  %v317_v33 = vstv %s1133_s10  ;;  %v314_v38 = vmul.f32 %v657_v28, %v313_v29  ;;  %v305_v49 = vadd.f32 %v304_v35, %v281_v34 }
  0x55   : > { %v309_v32 = vadd.f32 %v308_v25, %v287_v16  ;;  %s1159_s13 = sld [smem:[#allocation7 + $0x183]]  ;;  %v321_v36 = vstv %s1136_s7  ;;  %v318_v42 = vmul.f32 %v657_v28, %v317_v33 }
  0x56   : > { %s1162_s14 = sld [smem:[#allocation7 + $0x184]]  ;;  %v325_v39 = vstv %s1140_s8  ;;  %v322_v47 = vmul.f32 %v657_v28, %v321_v36  ;;  %v315_v53 = vadd.f32 %v314_v38, %v293_v37 }
  0x57   : > { %v329_v40 = vstv %s1144_s6  ;;  %s1166_s20 = sld [smem:[#allocation7 + $0x200]]  ;;  %v326_v50 = vmul.f32 %v657_v28, %v325_v39  ;;  %v319_v56 = vadd.f32 %v318_v42, %v297_v41 }
  0x58   : > { %v330_v43 = vmul.f32 %v657_v28, %v329_v40  ;;  %v335_v45 = vstv %s1148_s12  ;;  %s1170_s22 = sld [smem:[#allocation7 + $0x201]]  ;;  %v323_v60 = vadd.f32 %v322_v47, %v301_v46  ;;  %v681_v28 = vld [vmem:[%s1105_s5 + $0x30] sm:$0xff] }
  0x59   : > { %v339_v48 = vstv %s1152_s11  ;;  %s1173_s26 = sld [smem:[#allocation7 + $0x202]]  ;;  %v336_v54 = vmul.f32 %v663_v44, %v335_v45  ;;  %v327_v0 = vadd.f32 %v326_v50, %v305_v49  ;;  %v687_v45 = vld [vmem:[%s1105_s5 + $0x38] sm:$0xff] }
  0x5a   : > { %v331_v51 = vadd.f32 %v330_v43, %v309_v32  ;;  %v343_v52 = vstv %s1156_s9  ;;  %s1176_s30 = sld [smem:[#allocation7 + $0x203]]  ;;  %v340_v57 = vmul.f32 %v663_v44, %v339_v48 }
  0x5b   : > { %v347_v55 = vstv %s1159_s13  ;;  %s1179_s1 = sld [smem:[#allocation7 + $0x204]]  ;;  %v344_v61 = vmul.f32 %v663_v44, %v343_v52  ;;  %v337_v3 = vadd.f32 %v336_v54, %v315_v53 }
  0x5c   : > { %v351_v58 = vstv %s1162_s14  ;;  %s676_s23 = sld [smem:[#allocation7 + $0x280]]  ;;  %v348_v1 = vmul.f32 %v663_v44, %v347_v55  ;;  %v341_v7 = vadd.f32 %v340_v57, %v319_v56 }
  0x5d   : > { %v352_v62 = vmul.f32 %v663_v44, %v351_v58  ;;  %v357_v63 = vstv %s1166_s20  ;;  %s677_s25 = sld [smem:[#allocation7 + $0x281]]  ;;  %v345_v11 = vadd.f32 %v344_v61, %v323_v60 }
  0x5e   : > { %v361_v2 = vstv %s1170_s22  ;;  %s678_s29 = sld [smem:[#allocation7 + $0x282]]  ;;  %v358_v5 = vmul.f32 %v669_v59, %v357_v63  ;;  %v349_v14 = vadd.f32 %v348_v1, %v327_v0 }
  0x5f   : > { %v353_v4 = vadd.f32 %v352_v62, %v331_v51  ;;  %v365_v6 = vstv %s1173_s26  ;;  %s679_s10 = sld [smem:[#allocation7 + $0x283]]  ;;  %v362_v8 = vmul.f32 %v669_v59, %v361_v2 }
  0x60   : > { %v369_v9 = vstv %s1176_s30  ;;  %s680_s7 = sld [smem:[#allocation7 + $0x284]]  ;;  %v366_v12 = vmul.f32 %v669_v59, %v365_v6  ;;  %v359_v18 = vadd.f32 %v358_v5, %v337_v3 }
  0x61   : > { %v373_v13 = vstv %s1179_s1  ;;  %s682_s8 = sld [smem:[#allocation7 + $0x300]]  ;;  %v370_v15 = vmul.f32 %v669_v59, %v369_v9  ;;  %v363_v21 = vadd.f32 %v362_v8, %v341_v7 }
  0x62   : > { %v374_v16 = vmul.f32 %v669_v59, %v373_v13  ;;  %v379_v17 = vstv %s676_s23  ;;  %s683_s6 = sld [smem:[#allocation7 + $0x301]]  ;;  %v367_v25 = vadd.f32 %v366_v12, %v345_v11 }
  0x63   : > { %v380_v19 = vmul.f32 %v675_v10, %v379_v17  ;;  %v383_v20 = vstv %s677_s25  ;;  %s684_s12 = sld [smem:[#allocation7 + $0x302]]  ;;  %v371_v29 = vadd.f32 %v370_v15, %v349_v14 }
  0x64   : > { %v375_v22 = vadd.f32 %v374_v16, %v353_v4  ;;  %v384_v23 = vmul.f32 %v675_v10, %v383_v20  ;;  %v387_v24 = vstv %s678_s29  ;;  %s685_s11 = sld [smem:[#allocation7 + $0x303]] }
  0x65   : > { %v388_v26 = vmul.f32 %v675_v10, %v387_v24  ;;  %v391_v27 = vstv %s679_s10  ;;  %s686_s9 = sld [smem:[#allocation7 + $0x304]]  ;;  %v381_v32 = vadd.f32 %v380_v19, %v359_v18 }
  0x66   : > { %v392_v30 = vmul.f32 %v675_v10, %v391_v27  ;;  %v395_v31 = vstv %s680_s7  ;;  %s688_s13 = sld [smem:[#allocation7 + $0x380]]  ;;  %v385_v35 = vadd.f32 %v384_v23, %v363_v21 }
  0x67   : > { %v396_v33 = vmul.f32 %v675_v10, %v395_v31  ;;  %v401_v34 = vstv %s682_s8  ;;  %s689_s14 = sld [smem:[#allocation7 + $0x381]]  ;;  %v389_v38 = vadd.f32 %v388_v26, %v367_v25  ;;  %s642_s8 = sshll.u32 %s1101_s0, 3 }
  0x68   : > { %v402_v36 = vmul.f32 %v681_v28, %v401_v34  ;;  %v405_v37 = vstv %s683_s6  ;;  %s690_s20 = sld [smem:[#allocation7 + $0x382]]  ;;  %v393_v42 = vadd.f32 %v392_v30, %v371_v29  ;;  %s701_s6 = sshll.u32 %s1007_s19, 3 }
  0x69   : > { %v397_v39 = vadd.f32 %v396_v33, %v375_v22  ;;  %v406_v40 = vmul.f32 %v681_v28, %v405_v37  ;;  %v409_v41 = vstv %s684_s12  ;;  %s691_s22 = sld [smem:[#allocation7 + $0x383]] }
  0x6a   : > { %v410_v43 = vmul.f32 %v681_v28, %v409_v41  ;;  %v413_v44 = vstv %s685_s11  ;;  %s692_s26 = sld [smem:[#allocation7 + $0x384]]  ;;  %v403_v46 = vadd.f32 %v402_v36, %v381_v32 }
  0x6b   : > { %v414_v47 = vmul.f32 %v681_v28, %v413_v44  ;;  %v417_v48 = vstv %s686_s9  ;;  %v407_v49 = vadd.f32 %v406_v40, %v385_v35  ;;  %s442_s5 = sld [smem:[#allocation2]]  ;;  %s520_s9 = scalar_lea.hbm %s1229_s4, %s701_s6 }
  0x6c   : > { %v418_v50 = vmul.f32 %v681_v28, %v417_v48  ;;  %v423_v51 = vstv %s688_s13  ;;  %v411_v52 = vadd.f32 %v410_v43, %v389_v38  ;;  %s693_s30 = sld [smem:[#allocation2 + $0x1]]  ;;  %s256_s13 = scalar_lea.vmem [#allocation11], %s642_s8 }
  0x6d   : > { %v424_v53 = vmul.f32 %v687_v45, %v423_v51  ;;  %v427_v54 = vstv %s689_s14  ;;  %v415_v55 = vadd.f32 %v414_v47, %v393_v42  ;;  %s694_s1 = sld [smem:[#allocation2 + $0x2]]  ;;  %s522_s14 = sshll.u32 %s256_s13, 4  ;;  %s523_s14 = int_to_ptr.vmem [resolvable:$true] %s522_s14 }
  0x6e   : > { %v419_v56 = vadd.f32 %v418_v50, %v397_v39  ;;  %v428_v57 = vmul.f32 %v687_v45, %v427_v54  ;;  %v431_v58 = vstv %s690_s20  ;;  %s695_s23 = sld [smem:[#allocation2 + $0x3]]  ;;  %s524_s20 = sshll.u32 %s520_s9, 4  ;;  %s525_s20 = int_to_ptr.hbm [resolvable:$true] %s524_s20 }
  0x6f   : > { %v425_v59 = vadd.f32 %v424_v53, %v403_v46  ;;  %v432_v60 = vmul.f32 %v687_v45, %v431_v58  ;;  %v435_v61 = vstv %s691_s22  ;;  %s696_s25 = sld [smem:[#allocation2 + $0x4]]  ;;  %s510_s22 = scalar_lea.sflag [#allocation4], %s1101_s0 }
  0x70   : > { %v429_v62 = vadd.f32 %v428_v57, %v407_v49  ;;  %v436_v63 = vmul.f32 %v687_v45, %v435_v61  ;;  %v439_v0 = vstv %s692_s26  ;;  %s697_s29 = sld [smem:[#allocation2 + $0x5]]  ;;  %s889_s26 = sshra.s32 %s525_s20, 4  ;;  %s890_s26 = int_to_ptr.hbm [resolvable:$true] %s889_s26 }
  0x71   : > { %v433_v1 = vadd.f32 %v432_v60, %v411_v52  ;;  %v440_v2 = vmul.f32 %v687_v45, %v439_v0  ;;  %v460_v22 = vstv %s442_s5  ;;  %s698_s10 = sld [smem:[#allocation2 + $0x6]]  ;;  %s891_s19 = scalar_lea.hbm %s890_s26, 8 }
  0x72   : > { %v437_v3 = vadd.f32 %v436_v63, %v415_v55  ;;  %v451_v4 = vsub.f32 %v425_v59, %v429_v62  ;;  %v450_v17 = vmax.f32 %v425_v59, %v429_v62  ;;  %v462_v25 = vstv %s693_s30  ;;  %s699_s7 = sld [smem:[#allocation2 + $0x7]]  ;;  %p892_p4 = scmp.ne.s32.totalorder %s890_s26, %s891_s19 }
  0x73   : > { %v441_v5 = vadd.f32 %v440_v2, %v419_v56  ;;  %v474_v26 = vstv %s694_s1  ;;  %s895_s1 = scalar_lea.hbm %s1229_s4, 16  ;;  %p896_p0 = scmp.lt.s32.totalorder %s890_s26, %s1229_s4 }
  0x74   : > { %v452_v6 = vand.u32 2147483647, %v451_v4  ;;  %v465_v7 = vsub.f32 %v433_v1, %v437_v3  ;;  %v464_v20 = vmax.f32 %v433_v1, %v437_v3  ;;  %v476_v29 = vstv %s695_s23  ;;  %p893_p6 = pnand %p892_p4, %p1038_p11  ;;  %p897_p7 = scmp.lt.s32.totalorder %s895_s1, %s891_s19 }
  0x75   : > { %v478_v30 = vstv %s696_s25 }
  0x76   : > { %v453_v8 = vsub.f32 0.0, %v452_v6  ;;  %v466_v9 = vand.u32 2147483647, %v465_v7  ;;  %v491_v45 = vstv %s697_s29  ;;  %p894_p13 = pneg %p893_p6  ;;  %p898_p5 = por %p897_p7, %p896_p0 }
  0x77   : > { %v493_v46 = vstv %s698_s10 }
  0x78   : > { %v454_v10 = vmul.f32 1.442695, %v453_v8  ;;  %v467_v11 = vsub.f32 0.0, %v466_v9  ;;  %v495_v49 = vmul.f32 %v493_v46, %v441_v5  ;;  %v506_v60 = vstv %s699_s7  ;;  %p899_p8 = pnand %p898_p5, %p894_p13 }
  0x7a   : > { %784 = vpow2.f32 %v454_v10  ;;  %v468_v12 = vmul.f32 1.442695, %v467_v11 }
  0x7c   : > { %786 = vpow2.f32 %v468_v12 }
  0x80   : > { %v785_v13 = vpop.eup %784 }
  0x81   : > { %v456_v14 = vadd.f32 1.0, %v785_v13 }
  0x82   : > { %v787_v15 = vpop.eup %786 }
  0x83   : > { %788 = vlog2.f32 %v456_v14  ;;  %v470_v16 = vadd.f32 1.0, %v787_v15 }
  0x85   : > { %790 = vlog2.f32 %v470_v16 }
  0x89   : > { %v789_v18 = vpop.eup %788 }
  0x8a   : > { %v458_v19 = vmul.f32 0.6931472, %v789_v18 }
  0x8b   : > { %v791_v21 = vpop.eup %790 }
  0x8c   : > { %v459_v23 = vadd.f32 %v458_v19, %v450_v17  ;;  %v472_v24 = vmul.f32 0.6931472, %v791_v21 }
  0x8e   : > { %v461_v27 = vmul.f32 %v460_v22, %v459_v23  ;;  %v473_v28 = vadd.f32 %v472_v24, %v464_v20 }
  0x90   : > { %v463_v31 = vsub.f32 %v461_v27, %v462_v25  ;;  %v475_v32 = vmul.f32 %v474_v26, %v473_v28 }
  0x92   : > { %v477_v33 = vsub.f32 %v475_v32, %v476_v29  ;;  %v479_v34 = vmul.f32 %v478_v30, %v463_v31 }
  0x94   : > { %v480_v35 = vmul.f32 %v478_v30, %v477_v33 }
  0x96   : > { %v482_v36 = vsub.f32 %v479_v34, %v480_v35  ;;  %v481_v42 = vmax.f32 %v479_v34, %v480_v35 }
  0x98   : > { %v483_v37 = vand.u32 2147483647, %v482_v36 }
  0x9a   : > { %v484_v38 = vsub.f32 0.0, %v483_v37 }
  0x9c   : > { %v485_v39 = vmul.f32 1.442695, %v484_v38 }
  0x9e   : > { %792 = vpow2.f32 %v485_v39 }
  0xa4   : > { %v793_v40 = vpop.eup %792 }
  0xa5   : > { %v487_v41 = vadd.f32 1.0, %v793_v40 }
  0xa7   : > { %794 = vlog2.f32 %v487_v41 }
  0xad   : > { %v795_v43 = vpop.eup %794 }
  0xae   : > { %v489_v44 = vmul.f32 0.6931472, %v795_v43 }
  0xb0   : > { %v490_v47 = vadd.f32 %v489_v44, %v481_v42 }
  0xb2   : > { %v492_v48 = vmul.f32 %v491_v45, %v490_v47 }
  0xb4   : > { %v494_v50 = vmul.f32 %v493_v46, %v492_v48 }
  0xb6   : > { %v497_v51 = vsub.f32 %v494_v50, %v495_v49  ;;  %v496_v57 = vmax.f32 %v494_v50, %v495_v49 }
  0xb8   : > { %v498_v52 = vand.u32 2147483647, %v497_v51 }
  0xba   : > { %v499_v53 = vsub.f32 0.0, %v498_v52 }
  0xbc   : > { %v500_v54 = vmul.f32 1.442695, %v499_v53 }
  0xbe   : > { %796 = vpow2.f32 %v500_v54 }
  0xc4   : > { %v797_v55 = vpop.eup %796 }
  0xc5   : > { %v502_v56 = vadd.f32 1.0, %v797_v55 }
  0xc7   : > { %798 = vlog2.f32 %v502_v56 }
  0xcd   : > { %v799_v58 = vpop.eup %798 }
  0xce   : > { %v504_v59 = vmul.f32 0.6931472, %v799_v58 }
  0xd0   : > { %v505_v61 = vadd.f32 %v504_v59, %v496_v57 }
  0xd2   : > { %v507_v62 = vmul.f32 %v506_v60, %v505_v61 }
  0xd4   : > { %508 = vst [vmem:[%s256_s13] sm:$0xff] %v507_v62 }
  0xd5   : > { %902 = shalt.err (!%p899_p8)
}
  0xd6   : > { %718 = dma.vmem_to_hbm [thread:$0]  (%p1038_p11), %s523_s14, 128, %s525_s20, %s510_s22  }
  0xd7 PF: > { %s536_s0 = sand.u32 1, %s941_s15   ;;  %p1240_p9 = scmp.ge.s32.totalorder %s953_s18, 2 }
  0xd8   : > { %s537_s29 = scalar_lea.sflag [#allocation4], %s536_s0 }
  0xd9   : > { %p735_p10 = pnand %p1240_p9, %p1042_p12 }
  0xdb   : > { %p736_p1 = pneg %p735_p10 }
  0xdd   : > { %936 = dma.done.wait (%p736_p1), %s537_s29, 128  }
  0xde   : > { %938 = vsyncadd (%p736_p1), %s537_s29, 4294967168  ;;  %p20_p2 = scmp.ge.s32.totalorder %s1011_s21, 4   ;;  %s1241_s15 = smov %s945_s16 }
  0xdf   : > { %s1242_s16 = smov %s949_s17  ;;  %s1243_s17 = smov %s1023_s24 }
  0xe0   : > { %s1244_s18 = smov %s1011_s21  ;;  %22 = sbr.rel (!%p20_p2) target bundleno = 11 (0xb), region = 102 }
  0xe5   :  { %543 = vsyncpa [#allocation3], 1 }
  0xe6   :  { %545 = vsyncpa [#allocation3 + $0x1], 1 }
  0xe7   :  { %546 = vsyncpa [#allocation4], 1 }
  0xe8   :  { %548 = vsyncpa [#allocation4 + $0x1], 1 }
  0xe9   :  { %549 = vsyncpa [#allocation5], 1 }
  0xea   :  { %551 = vsyncpa [#allocation5 + $0x1], 1 }
  0xeb   :  { %552 = vsyncpa [#allocation8], 1 }
  0xec   :  { %553 = vsyncpa [#allocation6], 1 }
  0xed   :  { %555 = vsyncpa [#allocation6 + $0x1], 1 }

</bundles_post_ra>
